<compile_context>
chip_gen: v7x
topology: tpu7x:2x2x1
jax: 0.10.0
libtpu: 0.0.40
codegen_flags: <defaults>
</compile_context>

<pallas_src>
import functools

import jax
import jax.numpy as jnp
from jax.experimental import pallas as pl
from jax.experimental.pallas import tpu as pltpu


def _make_kernel(H, W):
    HW = H * W

    def kernel(x_ref, w0_ref, s0_ref, b0_ref,
               w1_ref, s1_ref, b1_ref, wd_ref, mask_ref, o_ref):
        # x_ref block: (1, Cin, H*W); o_ref block: (1, Cout, H*W)
        x = x_ref[0]                                         # (Cin, HW)

        def conv3x3(inp, w_mat):
            # inp: (C, HW), w_mat: (Cout, 9*C)  ->  (Cout, HW)
            patches = []
            for tap in range(9):
                oy = tap // 3 - 1
                ox = tap % 3 - 1
                if oy == 0 and ox == 0:
                    patches.append(inp)
                    continue
                shift = (-(oy * W + ox)) % HW
                rolled = pltpu.roll(inp, shift=shift, axis=1)
                # boundary mask (1, HW) zeroes the positions that would have
                # read zero-padding (also kills roll wrap-around).
                patches.append(rolled * mask_ref[tap:tap + 1, :])
            patch = jnp.concatenate(patches, axis=0)         # (9*C, HW)
            return jnp.dot(w_mat, patch, preferred_element_type=jnp.float32)

        # conv_0 -> bn_0 -> ReLU
        h0 = conv3x3(x, w0_ref[...])
        h0 = jnp.maximum(h0 * s0_ref[...] + b0_ref[...], 0.0)   # (Cout, HW)

        # conv_1 -> bn_1 -> ReLU
        h1 = conv3x3(h0, w1_ref[...])
        h1 = jnp.maximum(h1 * s1_ref[...] + b1_ref[...], 0.0)   # (Cout, HW)

        # down-sample path (1x1 conv), residual add, final ReLU
        ds = jnp.dot(wd_ref[...], x, preferred_element_type=jnp.float32)
        o_ref[0] = jnp.maximum(h1 + ds, 0.0).astype(o_ref.dtype)

    return kernel


def residual_block(x_nchw, params, eps=1e-5):
    """NCHW input. Folds BN, repacks weights for im2col, calls the kernel."""
    x = x_nchw.astype(jnp.float32)
    B, Cin, H, W = x.shape
    HW = H * W
    Cout = params["w0"].shape[0]

    # Channel-major activations: just a reshape of NCHW (no transpose).
    x2 = x.reshape(B, Cin, HW)

    # PyTorch OIHW weights -> (Cout, 9*C) im2col matrices; col index is
    # (ky*3+kx)*C + c, matching the in-kernel patch stacking order.
    w0m = jnp.transpose(params["w0"], (0, 2, 3, 1)).reshape(Cout, 9 * Cin)
    w0m = w0m.astype(jnp.float32)
    w1m = jnp.transpose(params["w1"], (0, 2, 3, 1)).reshape(Cout, 9 * Cout)
    w1m = w1m.astype(jnp.float32)
    wd = params["wd"][:, :, 0, 0].astype(jnp.float32)           # (Cout, Cin)

    # Fold BatchNorm (eval mode) into per-channel scale/bias, shaped (Cout, 1)
    # so they broadcast along the lane (H*W) axis.
    def fold(g, b, m, v):
        s = g / jnp.sqrt(v + eps)
        return (s.reshape(Cout, 1).astype(jnp.float32),
                (b - m * s).reshape(Cout, 1).astype(jnp.float32))

    s0, b0 = fold(params["g0"], params["b0"], params["m0"], params["v0"])
    s1, b1 = fold(params["g1"], params["b1"], params["m1"], params["v1"])

    # Precompute the 9 boundary masks for the 3x3 taps (static, batch-invariant).
    yy = jnp.arange(H).reshape(H, 1)
    xx = jnp.arange(W).reshape(1, W)
    masks = []
    for oy in (-1, 0, 1):
        for ox in (-1, 0, 1):
            m = ((yy + oy >= 0) & (yy + oy < H) &
                 (xx + ox >= 0) & (xx + ox < W))
            masks.append(m.reshape(1, HW))
    mask = jnp.concatenate(masks, axis=0).astype(jnp.float32)    # (9, HW)

    out = pl.pallas_call(
        _make_kernel(H, W),
        out_shape=jax.ShapeDtypeStruct((B, Cout, HW), jnp.float32),
        grid_spec=pltpu.PrefetchScalarGridSpec(
            num_scalar_prefetch=0,
            grid=(B,),
            in_specs=[
                pl.BlockSpec((1, Cin, HW), lambda b: (b, 0, 0)),
                pl.BlockSpec((Cout, 9 * Cin), lambda b: (0, 0)),
                pl.BlockSpec((Cout, 1), lambda b: (0, 0)),
                pl.BlockSpec((Cout, 1), lambda b: (0, 0)),
                pl.BlockSpec((Cout, 9 * Cout), lambda b: (0, 0)),
                pl.BlockSpec((Cout, 1), lambda b: (0, 0)),
                pl.BlockSpec((Cout, 1), lambda b: (0, 0)),
                pl.BlockSpec((Cout, Cin), lambda b: (0, 0)),
                pl.BlockSpec((9, HW), lambda b: (0, 0)),
            ],
            out_specs=pl.BlockSpec((1, Cout, HW), lambda b: (b, 0, 0)),
        ),
        compiler_params=pltpu.CompilerParams(
            dimension_semantics=("parallel",)),
    )(x2, w0m, s0, b0, w1m, s1, b1, wd, mask)

    # Back to NCHW: again just a reshape.
    return out.reshape(B, Cout, H, W)


# ---------------------------- pure-JAX reference ----------------------------
def residual_block_ref(x, p, eps=1e-5):
    dn = ("NCHW", "OIHW", "NCHW")

    def bn(h, g, b, m, v):
        sh = (1, -1, 1, 1)
        return (h - m.reshape(sh)) / jnp.sqrt(v.reshape(sh) + eps) \
               * g.reshape(sh) + b.reshape(sh)

    h = jax.lax.conv_general_dilated(x, p["w0"], (1, 1), ((1, 1), (1, 1)),
                                     dimension_numbers=dn)
    h = jnp.maximum(bn(h, p["g0"], p["b0"], p["m0"], p["v0"]), 0.0)
    h = jax.lax.conv_general_dilated(h, p["w1"], (1, 1), ((1, 1), (1, 1)),
                                     dimension_numbers=dn)
    h = jnp.maximum(bn(h, p["g1"], p["b1"], p["m1"], p["v1"]), 0.0)
    ds = jax.lax.conv_general_dilated(x, p["wd"], (1, 1), ((0, 0), (0, 0)),
                                      dimension_numbers=dn)
    return jnp.maximum(h + ds, 0.0)


if __name__ == "__main__":
    B, Cin, Cout, H, W = 2, 4, 8, 16, 16
    key = jax.random.PRNGKey(0)
    ks = jax.random.split(key, 12)

    params = {
        # conv weights, PyTorch OIHW shapes, bias=False
        "w0": 0.1 * jax.random.normal(ks[0], (Cout, Cin, 3, 3), jnp.float32),
        "w1": 0.1 * jax.random.normal(ks[1], (Cout, Cout, 3, 3), jnp.float32),
        "wd": 0.1 * jax.random.normal(ks[2], (Cout, Cin, 1, 1), jnp.float32),
        # BatchNorm2d(Cout) params + running stats (eval mode)
        "g0": 1.0 + 0.1 * jax.random.normal(ks[3], (Cout,), jnp.float32),
        "b0": 0.1 * jax.random.normal(ks[4], (Cout,), jnp.float32),
        "m0": 0.1 * jax.random.normal(ks[5], (Cout,), jnp.float32),
        "v0": 0.5 + jnp.abs(jax.random.normal(ks[6], (Cout,), jnp.float32)),
        "g1": 1.0 + 0.1 * jax.random.normal(ks[7], (Cout,), jnp.float32),
        "b1": 0.1 * jax.random.normal(ks[8], (Cout,), jnp.float32),
        "m1": 0.1 * jax.random.normal(ks[9], (Cout,), jnp.float32),
        "v1": 0.5 + jnp.abs(jax.random.normal(ks[10], (Cout,), jnp.float32)),
    }

    x = jax.random.normal(ks[11], (B, Cin, H, W), jnp.float32)

    out = residual_block(x, params)
    out = jax.block_until_ready(out)

    ref = residual_block_ref(x, params)
    assert out.shape == (B, Cout, H, W)
    assert jnp.allclose(out, ref, rtol=1e-4, atol=1e-4), \
        f"max abs err = {jnp.max(jnp.abs(out - ref))}"

    print("KERNEL_OK")
</pallas_src>

<mosaic_0001>
module attributes {stable_mosaic.version = 11 : i64} {
  func.func @kernel(%arg0: i32, %arg1: memref<1x4x256xf32, #tpu.memory_space<vmem>>, %arg2: memref<8x36xf32, #tpu.memory_space<vmem>>, %arg3: memref<8x1xf32, #tpu.memory_space<vmem>>, %arg4: memref<8x1xf32, #tpu.memory_space<vmem>>, %arg5: memref<8x72xf32, #tpu.memory_space<vmem>>, %arg6: memref<8x1xf32, #tpu.memory_space<vmem>>, %arg7: memref<8x1xf32, #tpu.memory_space<vmem>>, %arg8: memref<8x4xf32, #tpu.memory_space<vmem>>, %arg9: memref<9x256xf32, #tpu.memory_space<vmem>>, %arg10: memref<1x8x256xf32, #tpu.memory_space<vmem>>) attributes {dimension_semantics = [#tpu.dimension_semantics<parallel>], iteration_bounds = array<i64: 2>, scalar_prefetch = 0 : i64, scratch_operands = 0 : i64, tpu.core_type = #tpu.core_type<tc>, window_params = [{transform_indices = @transform_0, window_bounds = array<i64: 1, 4, 256>}, {pipeline_mode = #tpu.pipeline_mode<synchronous>, transform_indices = @transform_1, window_bounds = array<i64: 8, 36>}, {pipeline_mode = #tpu.pipeline_mode<synchronous>, transform_indices = @transform_2, window_bounds = array<i64: 8, 1>}, {pipeline_mode = #tpu.pipeline_mode<synchronous>, transform_indices = @transform_3, window_bounds = array<i64: 8, 1>}, {pipeline_mode = #tpu.pipeline_mode<synchronous>, transform_indices = @transform_4, window_bounds = array<i64: 8, 72>}, {pipeline_mode = #tpu.pipeline_mode<synchronous>, transform_indices = @transform_5, window_bounds = array<i64: 8, 1>}, {pipeline_mode = #tpu.pipeline_mode<synchronous>, transform_indices = @transform_6, window_bounds = array<i64: 8, 1>}, {pipeline_mode = #tpu.pipeline_mode<synchronous>, transform_indices = @transform_7, window_bounds = array<i64: 8, 4>}, {pipeline_mode = #tpu.pipeline_mode<synchronous>, transform_indices = @transform_8, window_bounds = array<i64: 9, 256>}, {transform_indices = @transform_9, window_bounds = array<i64: 1, 8, 256>}]} {
    %c0 = arith.constant 0 : index
    %c0_0 = arith.constant 0 : index
    %c0_1 = arith.constant 0 : index
    %0 = vector.load %arg1[%c0, %c0_0, %c0_1] : memref<1x4x256xf32, #tpu.memory_space<vmem>>, vector<1x4x256xf32>
    %1 = vector.shape_cast %0 : vector<1x4x256xf32> to vector<4x256xf32>
    %c0_2 = arith.constant 0 : index
    %c0_3 = arith.constant 0 : index
    %2 = vector.load %arg2[%c0_2, %c0_3] : memref<8x36xf32, #tpu.memory_space<vmem>>, vector<8x36xf32>
    %c17_i32 = arith.constant 17 : i32
    %3 = tpu.dynamic_rotate %1 by %c17_i32 dim 1 : vector<4x256xf32>, i32 -> vector<4x256xf32>
    %c0_4 = arith.constant 0 : index
    %c0_5 = arith.constant 0 : index
    %4 = vector.load %arg9[%c0_4, %c0_5] : memref<9x256xf32, #tpu.memory_space<vmem>>, vector<1x256xf32>
    %5 = vector.broadcast %4 : vector<1x256xf32> to vector<4x256xf32>
    %6 = arith.mulf %3, %5 : vector<4x256xf32>
    %c16_i32 = arith.constant 16 : i32
    %7 = tpu.dynamic_rotate %1 by %c16_i32 dim 1 : vector<4x256xf32>, i32 -> vector<4x256xf32>
    %c1 = arith.constant 1 : index
    %c0_6 = arith.constant 0 : index
    %8 = vector.load %arg9[%c1, %c0_6] : memref<9x256xf32, #tpu.memory_space<vmem>>, vector<1x256xf32>
    %9 = vector.broadcast %8 : vector<1x256xf32> to vector<4x256xf32>
    %10 = arith.mulf %7, %9 : vector<4x256xf32>
    %c15_i32 = arith.constant 15 : i32
    %11 = tpu.dynamic_rotate %1 by %c15_i32 dim 1 : vector<4x256xf32>, i32 -> vector<4x256xf32>
    %c2 = arith.constant 2 : index
    %c0_7 = arith.constant 0 : index
    %12 = vector.load %arg9[%c2, %c0_7] : memref<9x256xf32, #tpu.memory_space<vmem>>, vector<1x256xf32>
    %13 = vector.broadcast %12 : vector<1x256xf32> to vector<4x256xf32>
    %14 = arith.mulf %11, %13 : vector<4x256xf32>
    %c1_i32 = arith.constant 1 : i32
    %15 = tpu.dynamic_rotate %1 by %c1_i32 dim 1 : vector<4x256xf32>, i32 -> vector<4x256xf32>
    %c3 = arith.constant 3 : index
    %c0_8 = arith.constant 0 : index
    %16 = vector.load %arg9[%c3, %c0_8] : memref<9x256xf32, #tpu.memory_space<vmem>>, vector<1x256xf32>
    %17 = vector.broadcast %16 : vector<1x256xf32> to vector<4x256xf32>
    %18 = arith.mulf %15, %17 : vector<4x256xf32>
    %c255_i32 = arith.constant 255 : i32
    %19 = tpu.dynamic_rotate %1 by %c255_i32 dim 1 : vector<4x256xf32>, i32 -> vector<4x256xf32>
    %c5 = arith.constant 5 : index
    %c0_9 = arith.constant 0 : index
    %20 = vector.load %arg9[%c5, %c0_9] : memref<9x256xf32, #tpu.memory_space<vmem>>, vector<1x256xf32>
    %21 = vector.broadcast %20 : vector<1x256xf32> to vector<4x256xf32>
    %22 = arith.mulf %19, %21 : vector<4x256xf32>
    %c241_i32 = arith.constant 241 : i32
    %23 = tpu.dynamic_rotate %1 by %c241_i32 dim 1 : vector<4x256xf32>, i32 -> vector<4x256xf32>
    %c6 = arith.constant 6 : index
    %c0_10 = arith.constant 0 : index
    %24 = vector.load %arg9[%c6, %c0_10] : memref<9x256xf32, #tpu.memory_space<vmem>>, vector<1x256xf32>
    %25 = vector.broadcast %24 : vector<1x256xf32> to vector<4x256xf32>
    %26 = arith.mulf %23, %25 : vector<4x256xf32>
    %c240_i32 = arith.constant 240 : i32
    %27 = tpu.dynamic_rotate %1 by %c240_i32 dim 1 : vector<4x256xf32>, i32 -> vector<4x256xf32>
    %c7 = arith.constant 7 : index
    %c0_11 = arith.constant 0 : index
    %28 = vector.load %arg9[%c7, %c0_11] : memref<9x256xf32, #tpu.memory_space<vmem>>, vector<1x256xf32>
    %29 = vector.broadcast %28 : vector<1x256xf32> to vector<4x256xf32>
    %30 = arith.mulf %27, %29 : vector<4x256xf32>
    %c239_i32 = arith.constant 239 : i32
    %31 = tpu.dynamic_rotate %1 by %c239_i32 dim 1 : vector<4x256xf32>, i32 -> vector<4x256xf32>
    %c8 = arith.constant 8 : index
    %c0_12 = arith.constant 0 : index
    %32 = vector.load %arg9[%c8, %c0_12] : memref<9x256xf32, #tpu.memory_space<vmem>>, vector<1x256xf32>
    %33 = vector.broadcast %32 : vector<1x256xf32> to vector<4x256xf32>
    %34 = arith.mulf %31, %33 : vector<4x256xf32>
    %35 = tpu.concatenate %6, %10, %14, %18, %1, %22, %26, %30, %34 in 0 : vector<4x256xf32>, vector<4x256xf32>, vector<4x256xf32>, vector<4x256xf32>, vector<4x256xf32>, vector<4x256xf32>, vector<4x256xf32>, vector<4x256xf32>, vector<4x256xf32> -> vector<36x256xf32>
    %cst = arith.constant dense<0.000000e+00> : vector<8x256xf32>
    %36 = tpu.matmul %2, %35, %cst {dimension_numbers = #tpu.dot_dimension_numbers<[1], [0], [0], [1], [0, 0, 1, 1], [], []>} : vector<8x36xf32>, vector<36x256xf32>, vector<8x256xf32> -> vector<8x256xf32>
    %c0_13 = arith.constant 0 : index
    %c0_14 = arith.constant 0 : index
    %37 = vector.load %arg3[%c0_13, %c0_14] : memref<8x1xf32, #tpu.memory_space<vmem>>, vector<8x1xf32>
    %38 = vector.broadcast %37 : vector<8x1xf32> to vector<8x256xf32>
    %39 = arith.mulf %36, %38 : vector<8x256xf32>
    %c0_15 = arith.constant 0 : index
    %c0_16 = arith.constant 0 : index
    %40 = vector.load %arg4[%c0_15, %c0_16] : memref<8x1xf32, #tpu.memory_space<vmem>>, vector<8x1xf32>
    %41 = vector.broadcast %40 : vector<8x1xf32> to vector<8x256xf32>
    %42 = arith.addf %39, %41 : vector<8x256xf32>
    %cst_17 = arith.constant 0.000000e+00 : f32
    %43 = vector.broadcast %cst_17 : f32 to vector<8x256xf32>
    %44 = arith.maximumf %42, %43 : vector<8x256xf32>
    %c0_18 = arith.constant 0 : index
    %c0_19 = arith.constant 0 : index
    %45 = vector.load %arg5[%c0_18, %c0_19] : memref<8x72xf32, #tpu.memory_space<vmem>>, vector<8x72xf32>
    %c17_i32_20 = arith.constant 17 : i32
    %46 = tpu.dynamic_rotate %44 by %c17_i32_20 dim 1 : vector<8x256xf32>, i32 -> vector<8x256xf32>
    %c0_21 = arith.constant 0 : index
    %c0_22 = arith.constant 0 : index
    %47 = vector.load %arg9[%c0_21, %c0_22] : memref<9x256xf32, #tpu.memory_space<vmem>>, vector<1x256xf32>
    %48 = vector.broadcast %47 : vector<1x256xf32> to vector<8x256xf32>
    %49 = arith.mulf %46, %48 : vector<8x256xf32>
    %c16_i32_23 = arith.constant 16 : i32
    %50 = tpu.dynamic_rotate %44 by %c16_i32_23 dim 1 : vector<8x256xf32>, i32 -> vector<8x256xf32>
    %c1_24 = arith.constant 1 : index
    %c0_25 = arith.constant 0 : index
    %51 = vector.load %arg9[%c1_24, %c0_25] : memref<9x256xf32, #tpu.memory_space<vmem>>, vector<1x256xf32>
    %52 = vector.broadcast %51 : vector<1x256xf32> to vector<8x256xf32>
    %53 = arith.mulf %50, %52 : vector<8x256xf32>
    %c15_i32_26 = arith.constant 15 : i32
    %54 = tpu.dynamic_rotate %44 by %c15_i32_26 dim 1 : vector<8x256xf32>, i32 -> vector<8x256xf32>
    %c2_27 = arith.constant 2 : index
    %c0_28 = arith.constant 0 : index
    %55 = vector.load %arg9[%c2_27, %c0_28] : memref<9x256xf32, #tpu.memory_space<vmem>>, vector<1x256xf32>
    %56 = vector.broadcast %55 : vector<1x256xf32> to vector<8x256xf32>
    %57 = arith.mulf %54, %56 : vector<8x256xf32>
    %c1_i32_29 = arith.constant 1 : i32
    %58 = tpu.dynamic_rotate %44 by %c1_i32_29 dim 1 : vector<8x256xf32>, i32 -> vector<8x256xf32>
    %c3_30 = arith.constant 3 : index
    %c0_31 = arith.constant 0 : index
    %59 = vector.load %arg9[%c3_30, %c0_31] : memref<9x256xf32, #tpu.memory_space<vmem>>, vector<1x256xf32>
    %60 = vector.broadcast %59 : vector<1x256xf32> to vector<8x256xf32>
    %61 = arith.mulf %58, %60 : vector<8x256xf32>
    %c255_i32_32 = arith.constant 255 : i32
    %62 = tpu.dynamic_rotate %44 by %c255_i32_32 dim 1 : vector<8x256xf32>, i32 -> vector<8x256xf32>
    %c5_33 = arith.constant 5 : index
    %c0_34 = arith.constant 0 : index
    %63 = vector.load %arg9[%c5_33, %c0_34] : memref<9x256xf32, #tpu.memory_space<vmem>>, vector<1x256xf32>
    %64 = vector.broadcast %63 : vector<1x256xf32> to vector<8x256xf32>
    %65 = arith.mulf %62, %64 : vector<8x256xf32>
    %c241_i32_35 = arith.constant 241 : i32
    %66 = tpu.dynamic_rotate %44 by %c241_i32_35 dim 1 : vector<8x256xf32>, i32 -> vector<8x256xf32>
    %c6_36 = arith.constant 6 : index
    %c0_37 = arith.constant 0 : index
    %67 = vector.load %arg9[%c6_36, %c0_37] : memref<9x256xf32, #tpu.memory_space<vmem>>, vector<1x256xf32>
    %68 = vector.broadcast %67 : vector<1x256xf32> to vector<8x256xf32>
    %69 = arith.mulf %66, %68 : vector<8x256xf32>
    %c240_i32_38 = arith.constant 240 : i32
    %70 = tpu.dynamic_rotate %44 by %c240_i32_38 dim 1 : vector<8x256xf32>, i32 -> vector<8x256xf32>
    %c7_39 = arith.constant 7 : index
    %c0_40 = arith.constant 0 : index
    %71 = vector.load %arg9[%c7_39, %c0_40] : memref<9x256xf32, #tpu.memory_space<vmem>>, vector<1x256xf32>
    %72 = vector.broadcast %71 : vector<1x256xf32> to vector<8x256xf32>
    %73 = arith.mulf %70, %72 : vector<8x256xf32>
    %c239_i32_41 = arith.constant 239 : i32
    %74 = tpu.dynamic_rotate %44 by %c239_i32_41 dim 1 : vector<8x256xf32>, i32 -> vector<8x256xf32>
    %c8_42 = arith.constant 8 : index
    %c0_43 = arith.constant 0 : index
    %75 = vector.load %arg9[%c8_42, %c0_43] : memref<9x256xf32, #tpu.memory_space<vmem>>, vector<1x256xf32>
    %76 = vector.broadcast %75 : vector<1x256xf32> to vector<8x256xf32>
    %77 = arith.mulf %74, %76 : vector<8x256xf32>
    %78 = tpu.concatenate %49, %53, %57, %61, %44, %65, %69, %73, %77 in 0 : vector<8x256xf32>, vector<8x256xf32>, vector<8x256xf32>, vector<8x256xf32>, vector<8x256xf32>, vector<8x256xf32>, vector<8x256xf32>, vector<8x256xf32>, vector<8x256xf32> -> vector<72x256xf32>
    %cst_44 = arith.constant dense<0.000000e+00> : vector<8x256xf32>
    %79 = tpu.matmul %45, %78, %cst_44 {dimension_numbers = #tpu.dot_dimension_numbers<[1], [0], [0], [1], [0, 0, 1, 1], [], []>} : vector<8x72xf32>, vector<72x256xf32>, vector<8x256xf32> -> vector<8x256xf32>
    %c0_45 = arith.constant 0 : index
    %c0_46 = arith.constant 0 : index
    %80 = vector.load %arg6[%c0_45, %c0_46] : memref<8x1xf32, #tpu.memory_space<vmem>>, vector<8x1xf32>
    %81 = vector.broadcast %80 : vector<8x1xf32> to vector<8x256xf32>
    %82 = arith.mulf %79, %81 : vector<8x256xf32>
    %c0_47 = arith.constant 0 : index
    %c0_48 = arith.constant 0 : index
    %83 = vector.load %arg7[%c0_47, %c0_48] : memref<8x1xf32, #tpu.memory_space<vmem>>, vector<8x1xf32>
    %84 = vector.broadcast %83 : vector<8x1xf32> to vector<8x256xf32>
    %85 = arith.addf %82, %84 : vector<8x256xf32>
    %cst_49 = arith.constant 0.000000e+00 : f32
    %86 = vector.broadcast %cst_49 : f32 to vector<8x256xf32>
    %87 = arith.maximumf %85, %86 : vector<8x256xf32>
    %c0_50 = arith.constant 0 : index
    %c0_51 = arith.constant 0 : index
    %88 = vector.load %arg8[%c0_50, %c0_51] : memref<8x4xf32, #tpu.memory_space<vmem>>, vector<8x4xf32>
    %cst_52 = arith.constant dense<0.000000e+00> : vector<8x256xf32>
    %89 = tpu.matmul %88, %1, %cst_52 {dimension_numbers = #tpu.dot_dimension_numbers<[1], [0], [0], [1], [0, 0, 1, 1], [], []>} : vector<8x4xf32>, vector<4x256xf32>, vector<8x256xf32> -> vector<8x256xf32>
    %90 = arith.addf %87, %89 : vector<8x256xf32>
    %cst_53 = arith.constant 0.000000e+00 : f32
    %91 = vector.broadcast %cst_53 : f32 to vector<8x256xf32>
    %92 = arith.maximumf %90, %91 : vector<8x256xf32>
    %c0_54 = arith.constant 0 : index
    %c0_55 = arith.constant 0 : index
    %c0_56 = arith.constant 0 : index
    %93 = vector.load %arg10[%c0_54, %c0_55, %c0_56] : memref<1x8x256xf32, #tpu.memory_space<vmem>>, vector<1x8x256xf32>
    %94 = vector.shape_cast %93 : vector<1x8x256xf32> to vector<8x256xf32>
    %95 = vector.shape_cast %92 : vector<8x256xf32> to vector<1x8x256xf32>
    tpu.vector_store %arg10[%c0_54, %c0_55, %c0_56], %95 {strides = array<i32>} : memref<1x8x256xf32, #tpu.memory_space<vmem>>, vector<1x8x256xf32>,
    return
  }
  func.func @transform_0(%arg0: i32) -> (i32, i32, i32) {
    %c0_i32 = arith.constant 0 : i32
    %c0_i32_0 = arith.constant 0 : i32
    %c0_i32_1 = arith.constant 0 : i32
    return %arg0, %c0_i32, %c0_i32_0 : i32, i32, i32
  }
  func.func @transform_1(%arg0: i32) -> (i32, i32) {
    %c0_i32 = arith.constant 0 : i32
    %c0_i32_0 = arith.constant 0 : i32
    %c0_i32_1 = arith.constant 0 : i32
    return %c0_i32, %c0_i32_0 : i32, i32
  }
  func.func @transform_2(%arg0: i32) -> (i32, i32) {
    %c0_i32 = arith.constant 0 : i32
    %c0_i32_0 = arith.constant 0 : i32
    %c0_i32_1 = arith.constant 0 : i32
    return %c0_i32, %c0_i32_0 : i32, i32
  }
  func.func @transform_3(%arg0: i32) -> (i32, i32) {
    %c0_i32 = arith.constant 0 : i32
    %c0_i32_0 = arith.constant 0 : i32
    %c0_i32_1 = arith.constant 0 : i32
    return %c0_i32, %c0_i32_0 : i32, i32
  }
  func.func @transform_4(%arg0: i32) -> (i32, i32) {
    %c0_i32 = arith.constant 0 : i32
    %c0_i32_0 = arith.constant 0 : i32
    %c0_i32_1 = arith.constant 0 : i32
    return %c0_i32, %c0_i32_0 : i32, i32
  }
  func.func @transform_5(%arg0: i32) -> (i32, i32) {
    %c0_i32 = arith.constant 0 : i32
    %c0_i32_0 = arith.constant 0 : i32
    %c0_i32_1 = arith.constant 0 : i32
    return %c0_i32, %c0_i32_0 : i32, i32
  }
  func.func @transform_6(%arg0: i32) -> (i32, i32) {
    %c0_i32 = arith.constant 0 : i32
    %c0_i32_0 = arith.constant 0 : i32
    %c0_i32_1 = arith.constant 0 : i32
    return %c0_i32, %c0_i32_0 : i32, i32
  }
  func.func @transform_7(%arg0: i32) -> (i32, i32) {
    %c0_i32 = arith.constant 0 : i32
    %c0_i32_0 = arith.constant 0 : i32
    %c0_i32_1 = arith.constant 0 : i32
    return %c0_i32, %c0_i32_0 : i32, i32
  }
  func.func @transform_8(%arg0: i32) -> (i32, i32) {
    %c0_i32 = arith.constant 0 : i32
    %c0_i32_0 = arith.constant 0 : i32
    %c0_i32_1 = arith.constant 0 : i32
    return %c0_i32, %c0_i32_0 : i32, i32
  }
  func.func @transform_9(%arg0: i32) -> (i32, i32, i32) {
    %c0_i32 = arith.constant 0 : i32
    %c0_i32_0 = arith.constant 0 : i32
    %c0_i32_1 = arith.constant 0 : i32
    return %arg0, %c0_i32, %c0_i32_0 : i32, i32, i32
  }
}

</mosaic_0001>

<bundles_post_ra>
// kernel: tpu_custom_call.1
= control target key start
LH: loop header
LB: loop body
LE: loop exit
PB: predicated region body
PF: predicated region fallthrough
CT: control target
= control target key end

     0   :  { %14 = vsyncpa [#allocation3], 0  ;;  %s1693_s0 = inlined_call_operand.vmem [shape: f32[2,4,256], index: 0, kind: input, shape index: {}]   ;;  %s1694_s1 = inlined_call_operand.vmem [shape: f32[8,36], index: 1, kind: input, shape index: {}]   ;;  %s1695_s2 = inlined_call_operand.vmem [shape: f32[8,1], index: 2, kind: input, shape index: {}]   ;;  %s1696_s3 = inlined_call_operand.vmem [shape: f32[8,1], index: 3, kind: input, shape index: {}]   ;;  %s1697_s4 = inlined_call_operand.hbm [shape: f32[8,72], index: 4, kind: input, shape index: {}]   ;;  %s1698_s5 = inlined_call_operand.vmem [shape: f32[8,1], index: 5, kind: input, shape index: {}]   ;;  %s1699_s6 = inlined_call_operand.vmem [shape: f32[8,1], index: 6, kind: input, shape index: {}]   ;;  %s1700_s7 = inlined_call_operand.vmem [shape: f32[8,4], index: 7, kind: input, shape index: {}]   ;;  %s1701_s8 = inlined_call_operand.vmem [shape: f32[9,256], index: 8, kind: input, shape index: {}]   ;;  %s1702_s9 = inlined_call_operand.hbm [shape: f32[2,8,256], index: 9, kind: output, shape index: {}]  }
   0x1   :  { %15 = vsyncpa [#allocation4], 0 }
   0x2   :  { %17 = vsyncpa [#allocation4 + $0x1], 0  ;;  %s1263_s30 = smov 0   ;;  %s1265_s10 = smov 0  }
   0x3   :  { %s1267_s11 = smov 0   ;;  %s1269_s12 = smov 0  }
   0x4 LB: > { %s1284_s13 = sadd.s32 4294967295, %s1199_s12   ;;  %s988_s14 = sadd.s32 4294967294, %s1199_s12   ;;  %s1199_s12 = sphi %s1269_s12, %s1724_s12   ;;  %s1195_s11 = sphi %s1267_s11, %s1723_s11   ;;  %s1191_s10 = sphi %s1265_s10, %s1722_s10   ;;  %s1187_s30 = sphi %s1263_s30, %s1721_s30  }
   0x5   : > { %s1288_s15 = sadd.s32 1, %s1199_s12   ;;  %s224_s16 = sadd.s32 1, %s1195_s11 }
   0x6   : > { %s221_s17 = ssub.s32 %s1199_s12, %s1288_s15  ;;  %p234_p0 = scmp.ne.s32.totalorder %s1195_s11, %s1191_s10 }
   0x7   : > { %p222_p1 = scmp.eq.s32.totalorder %s221_s17, 0  ;;  %p235_p2 = scmp.eq.s32.totalorder %s1284_s13, 1 }
   0x8   : > { %p240_p3 = scmp.ne.s32.totalorder %s1191_s10, %s1187_s30  ;;  %p241_p4 = scmp.eq.s32.totalorder %s988_s14, 1 }
   0x9   : > { %s1299_s18 = scalar_select %p222_p1, %s1195_s11, %s224_s16  }
   0xa   : > { %p1301_p5 = por %p235_p2, %p234_p0  ;;  %p1305_p6 = por %p241_p4, %p240_p3 }
   0xb   : > { %p989_p7 = scmp.ge.s32.totalorder %s1199_s12, 1  ;;  %p248_p8 = scmp.lt.s32.totalorder %s1199_s12, 3 }
   0xc   : > { %s1710_s19 = scalar_select %p1301_p5, 1, 0 }
   0xd   : > { %s1711_s20 = scalar_select %p1305_p6, 1, 0 }
   0xe   : > { %p1703_p9 = scmp.eq.s32.totalorder %s1284_s13, 0  ;;  %p1312_p10 = pnand %p989_p7, %p248_p8 }
   0xf   : > { %s1201_s22 = smov [#allocation2]   ;;  %s1105_s27 = scalar_lea.hbm %s1697_s4, 128 }
  0x10   : > { %s1712_s21 = scalar_select %p1312_p10, 1, 0 }
  0x11   : > { %s270_s23 = sshll.u32 %s1201_s22, 4  ;;  %p1048_p11 = pneg %p1312_p10  ;;  %s271_s23 = int_to_ptr.vmem [resolvable:$true] %s270_s23 }
  0x12   : > { %p1106_p13 = scmp.ne.s32.totalorder %s1697_s4, %s1105_s27  ;;  %p1112_p3 = scmp.lt.u32.totalorder %s1105_s27, %s1697_s4 }
  0x13   : > { %p1320_p12 = pnand %p1703_p9, %p1048_p11 }
  0x15   : > { %p1107_p0 = pneg %p1320_p12 }
  0x17   : > { %p1108_p1 = pnand %p1107_p0, %p1106_p13 }
  0x19   : > { %p1109_p2 = pneg %p1108_p1 }
  0x1b   : > { %p1114_p4 = pnand %p1112_p3, %p1109_p2 }
  0x1d   : > { %1117 = shalt.err (!%p1114_p4)
}
  0x1e   : > { %s1118_s17 = scalar_lea.vmem %s271_s23, 128  ;;  %p1126_p9 = scmp.lt.s32.totalorder %s271_s23, %s271_s23 }
  0x1f   : > { %p1119_p7 = scmp.ne.s32.totalorder %s271_s23, %s1118_s17  ;;  %p1127_p6 = scmp.lt.s32.totalorder %s1118_s17, %s1118_s17 }
  0x21   : > { %p1121_p8 = pnand %p1119_p7, %p1107_p0  ;;  %p1128_p5 = por %p1127_p6, %p1126_p9 }
  0x23   : > { %p1122_p11 = pneg %p1121_p8 }
  0x25   : > { %p1129_p10 = pnand %p1128_p5, %p1122_p11 }
  0x27   : > { %1132 = shalt.err (!%p1129_p10)
}
  0x28   : > { %1051 = dma.hbm_to_vmem [thread:$0]  (!%p1320_p12), %s1697_s4, 128, %s271_s23, [#allocation3]  }
  0x29   : > { %p1714_p13 = scmp.ne.s32.totalorder %s1712_s21, 0 }
  0x2a   : > { %p1715_p1 = scmp.eq.s32.totalorder (!%p1714_p13), %s1284_s13, 0 }
  0x2b   : > { %303 = sbr.rel (%p1714_p13) target bundleno = 815 (0x32f), region = 56 }
  0x32   : > { %1178 = dma.done.wait (%p1715_p1), [#allocation3], 128   ;;  %p1716_p0 = pmov %p1715_p1 }
  0x33   : > { %p339_p6 = scmp.lt.s32.totalorder %s1284_s13, 1  ;;  %s1202_s23 = smov 1   ;;  %v1208_v2 = vmov 0.0   ;;  %v1210_v3 = vmov 0   ;;  %v640_v4 = vld [vmem:[%s1695_s2] sm:$0xff]  ;;  %v353_v6 = vlaneseq  ;;  %vm550_vm4 = vcmask 1043456  }
  0x34   : > { %1180 = vsyncadd (%p1716_p0), [#allocation3], 4294967168  ;;  %s1203_s21 = smov 16   ;;  %s1204_s14 = smov 17   ;;  %633 = vmatprep.mubr.f32.mxu0 %v1208_v2  ;;  %791 = vmatprep.mubr.f32.mxu1 %v1208_v2  ;;  %v648_v5 = vld [vmem:[%s1696_s3] sm:$0xff]  ;;  %vm559_vm9 = vcmask 293888  }
  0x35   : > { %s340_s26 = scalar_select %p339_p6, %s1284_s13, 1  ;;  %1102 = vset.pattern.permute.xlu0 %v1210_v3  ;;  %1103 = vset.pattern.permute.xlu1 %v1210_v3  ;;  %v361_v7 = vshrl.u32 %v353_v6, 7  ;;  %v1397_v8 = vand.u32 127, %v353_v6  ;;  %v999_v13 = vld [vmem:[%s1701_s8 + $0x3] ss:$8 sm:$0x3] }
  0x36   : > { %s1205_s16 = smov 15   ;;  %s1206_s17 = smov 127   ;;  %v997_v14 = vld [vmem:[%s1701_s8 + $0x1] ss:$8 sm:$0x3]  ;;  %vm817_vm10 = vcmask 31744  }
  0x37   : > { %s1016_s27 = sshll.u32 %s340_s26, 3  ;;  %s1708_s22 = smov 112   ;;  %v1399_v11 = vsub.s32 0, %v361_v7  ;;  %v1401_v12 = vsub.s32 1, %v361_v7  ;;  %vm420_vm0 = vcmp.lt.s32.totalorder %v1397_v8, 1  ;;  %vm376_vm1 = vcmp.lt.s32.totalorder %v1397_v8, 16 }
  0x38   : > { %s343_s29 = scalar_lea.vmem %s1693_s0, %s1016_s27  ;;  %s1209_s25 = smov 113   ;;  %v358_v19 = vld [vmem:[%s1701_s8] ss:$8 sm:$0x3]  ;;  %vm355_vm2 = vcmp.lt.s32.totalorder %v1397_v8, 17  ;;  %vm398_vm3 = vcmp.lt.s32.totalorder %v1397_v8, 15 }
  0x39   : > { %v1351_v0 = vld [vmem:[%s343_s29] sm:$0xff]  ;;  %s1706_s26 = smov 111   ;;  %v1411_v17 = vrot.slane %v999_v13, %v1399_v11  ;;  %v1414_v18 = vrot.slane %v999_v13, %v1401_v12  ;;  %v1425_v22 = vrot.slane %v997_v14, %v1399_v11  ;;  %v1428_v23 = vrot.slane %v997_v14, %v1401_v12  ;;  %s336_s27 = sand.u32 1, %s1191_s10  }
  0x3a   : > { %416 = vrot.lane.b32.xlu1 %v1351_v0, %s1202_s23  ;;  %372 = vrot.lane.b32.xlu0 %v1351_v0, %s1203_s21  ;;  %v1359_v1 = vcombine.high %v1351_v0, %v1351_v0  ;;  %v998_v24 = vld [vmem:[%s1701_s8 + $0x2] ss:$8 sm:$0x3]  ;;  %v1435_v25 = vrot.slane %v358_v19, %v1399_v11  ;;  %v1438_v26 = vrot.slane %v358_v19, %v1401_v12  ;;  %vm442_vm5 = vcmp.lt.s32.totalorder %v1397_v8, 127  ;;  %s994_s28 = sshll.u32 %s336_s27, 4  ;;  %s1017_s24 = sshll.u32 %s1284_s13, 8 }
  0x3b   : > { %v1450_v35 = vrot.slane %v998_v24, %v1399_v11  ;;  %v1453_v36 = vrot.slane %v998_v24, %v1401_v12  ;;  %v1000_v43 = vld [vmem:[%s1701_s8 + $0x5] ss:$8 sm:$0x3]  ;;  %v1002_v54 = vld [vmem:[%s1701_s8 + $0x7] ss:$8 sm:$0x3] }
  0x3c   : > { %v1472_v52 = vrot.slane %v1000_v43, %v1399_v11  ;;  %v1475_v53 = vrot.slane %v1000_v43, %v1401_v12  ;;  %vm486_vm6 = vcmp.lt.s32.totalorder %v1397_v8, 112  ;;  %v1001_v6 = vld [vmem:[%s1701_s8 + $0x6] ss:$8 sm:$0x3]  ;;  %vm464_vm7 = vcmp.lt.s32.totalorder %v1397_v8, 113  ;;  %s338_s29 = scalar_lea.vmem [#allocation5], %s994_s28 }
  0x3d   : > { %v1003_v24 = vld [vmem:[%s1701_s8 + $0x10] ss:$8 sm:$0x3]  ;;  %vm508_vm8 = vcmp.lt.s32.totalorder %v1397_v8, 111  ;;  %vm723_vm11 = vcmask 588800   ;;  %p1719_p9 = scmp.ne.s32.totalorder %s1710_s19, 0 }
  0x3e   : > { %349 = vrot.lane.b32.xlu0 %v1351_v0, %s1204_s14  ;;  %418 = vrot.lane.b32.xlu1 %v1359_v1, %s1202_s23  ;;  %s1212_s13 = smov [#allocation5]  }
  0x42   : > { %351 = vrot.lane.b32.xlu1 %v1359_v1, %s1204_s14  ;;  %374 = vrot.lane.b32.xlu0 %v1359_v1, %s1203_s21 }
  0x46   : > { %396 = vrot.lane.b32.xlu1 %v1359_v1, %s1205_s16  ;;  %394 = vrot.lane.b32.xlu0 %v1351_v0, %s1205_s16 }
  0x4a   : > { %440 = vrot.lane.b32.xlu1 %v1359_v1, %s1206_s17  ;;  %438 = vrot.lane.b32.xlu0 %v1351_v0, %s1206_s17 }
  0x4e   : > { %484 = vrot.lane.b32.xlu1 %v1359_v1, %s1708_s22  ;;  %482 = vrot.lane.b32.xlu0 %v1351_v0, %s1708_s22  ;;  %s1137_s22 = sshll.u32 %s1212_s13, 4  ;;  %s1138_s22 = int_to_ptr.vmem [resolvable:$false] %s1137_s22 }
  0x52   : > { %462 = vrot.lane.b32.xlu1 %v1359_v1, %s1209_s25  ;;  %460 = vrot.lane.b32.xlu0 %v1351_v0, %s1209_s25 }
  0x56   : > { %506 = vrot.lane.b32.xlu1 %v1359_v1, %s1706_s26  ;;  %504 = vrot.lane.b32.xlu0 %v1351_v0, %s1706_s26  ;;  %s1139_s26 = scalar_lea.vmem %s1138_s22, 512 }
  0x5a   : > { %643 = vperm.xlu0 %1102, %v640_v4   ;;  %651 = vperm.xlu1 %1103, %v648_v5   ;;  %v1490_v4 = vrot.slane %v1002_v54, %v1399_v11  ;;  %v1493_v5 = vrot.slane %v1002_v54, %v1401_v12 }
  0xac   : > { %v417_v9 = vpop.permute.xlu1 %416  ;;  %v373_v10 = vpop.permute.xlu0 %372 }
  0xb0   : > { %v350_v15 = vpop.permute.xlu0 %349  ;;  %v419_v16 = vpop.permute.xlu1 %418 }
  0xb1   : > { %v421_v20 = vsel %vm420_vm0, %v417_v9, %v419_v16  ;;  %v422_v21 = vsel %vm420_vm0, %v419_v16, %v417_v9 }
  0xb2   : > { %v436_v29 = vmul.f32 %v1411_v17, %v422_v21  ;;  %v437_v30 = vmul.f32 %v1414_v18, %v421_v20  ;;  %v1508_v20 = vrot.slane %v1001_v6, %v1399_v11  ;;  %v1511_v21 = vrot.slane %v1001_v6, %v1401_v12 }
  0xb4   : > { %v352_v27 = vpop.permute.xlu1 %351  ;;  %v375_v28 = vpop.permute.xlu0 %374  ;;  %v534_v44 = vrot.slane %v436_v29, 4  ;;  %v535_v45 = vrot.slane %v437_v30, 4 }
  0xb5   : > { %v377_v31 = vsel %vm376_vm1, %v373_v10, %v375_v28  ;;  %v378_v32 = vsel %vm376_vm1, %v375_v28, %v373_v10  ;;  %v356_v37 = vsel %vm355_vm2, %v350_v15, %v352_v27  ;;  %v357_v38 = vsel %vm355_vm2, %v352_v27, %v350_v15 }
  0xb6   : > { %v392_v33 = vmul.f32 %v1425_v22, %v378_v32  ;;  %v393_v34 = vmul.f32 %v1428_v23, %v377_v31  ;;  %v370_v48 = vmul.f32 %v1435_v25, %v357_v38  ;;  %v371_v49 = vmul.f32 %v1438_v26, %v356_v37 }
  0xb8   : > { %v528_v39 = vrot.slane %v392_v33, 4  ;;  %v529_v40 = vrot.slane %v393_v34, 4  ;;  %v397_v41 = vpop.permute.xlu1 %396  ;;  %v395_v42 = vpop.permute.xlu0 %394  ;;  %v1522_v33 = vrot.slane %v1003_v24, %v1401_v12 }
  0xb9   : > { %v399_v46 = vsel %vm398_vm3, %v395_v42, %v397_v41  ;;  %v400_v47 = vsel %vm398_vm3, %v397_v41, %v395_v42 }
  0xba   : > { %v414_v50 = vmul.f32 %v1450_v35, %v400_v47  ;;  %v415_v51 = vmul.f32 %v1453_v36, %v399_v46  ;;  %v552_v57 = vsel %vm550_vm4, %v371_v49, %v529_v40  ;;  %v551_v59 = vsel %vm550_vm4, %v370_v48, %v528_v39 }
  0xbb   : > { %v1527_v40 = vrot.slane %v1003_v24, %v1399_v11 }
  0xbc   : > { %v441_v55 = vpop.permute.xlu1 %440  ;;  %v439_v56 = vpop.permute.xlu0 %438  ;;  %v554_v58 = vsel %vm550_vm4, %v415_v51, %v535_v45  ;;  %v553_v60 = vsel %vm550_vm4, %v414_v50, %v534_v44  ;;  %v345_v51 = vld [vmem:[%s1694_s1] sm:$0xff] }
  0xbd   : > { %v443_v61 = vsel %vm442_vm5, %v439_v56, %v441_v55  ;;  %v444_v62 = vsel %vm442_vm5, %v441_v55, %v439_v56  ;;  %v1018_v63 = vpack.c.bf16 %v554_v58, %v552_v57  ;;  %v1020_v3 = vpack.c.bf16 %v553_v60, %v551_v59 }
  0xbe   : > { %v458_v7 = vmul.f32 %v1472_v52, %v443_v61  ;;  %v459_v9 = vmul.f32 %v1475_v53, %v444_v62 }
  0xbf   : > { %1019 = vmatprep.subr.bf16.mxu0 %v1018_v63 }
  0xc0   : > { %v485_v10 = vpop.permute.xlu1 %484  ;;  %1021 = vmatpush1.bf16.msra.mxu0 %v1020_v3  ;;  %v483_v13 = vpop.permute.xlu0 %482  ;;  %v540_v27 = vrot.slane %v458_v7, 4  ;;  %v541_v28 = vrot.slane %v459_v9, 4 }
  0xc1   : > { %v487_v14 = vsel %vm486_vm6, %v483_v13, %v485_v10  ;;  %v488_v15 = vsel %vm486_vm6, %v485_v10, %v483_v13 }
  0xc2   : > { %v502_v16 = vmul.f32 %v1490_v4, %v487_v14  ;;  %v503_v19 = vmul.f32 %v1493_v5, %v488_v15  ;;  %v556_v42 = vsel %vm550_vm4, %v1359_v1, %v541_v28  ;;  %v555_v12 = vsel %vm550_vm4, %v1351_v0, %v540_v27 }
  0xc4   : > { %v463_v29 = vpop.permute.xlu1 %462  ;;  %v461_v30 = vpop.permute.xlu0 %460  ;;  %v546_v34 = vrot.slane %v502_v16, 4  ;;  %v547_v37 = vrot.slane %v503_v19, 4 }
  0xc5   : > { %v465_v31 = vsel %vm464_vm7, %v461_v30, %v463_v29  ;;  %v466_v32 = vsel %vm464_vm7, %v463_v29, %v461_v30 }
  0xc6   : > { %v480_v38 = vmul.f32 %v1508_v20, %v465_v31  ;;  %v481_v39 = vmul.f32 %v1511_v21, %v466_v32 }
  0xc8   : > { %v507_v41 = vpop.permute.xlu1 %506  ;;  %v558_v43 = vsel %vm550_vm4, %v481_v39, %v547_v37  ;;  %v505_v44 = vpop.permute.xlu0 %504  ;;  %v557_v45 = vsel %vm550_vm4, %v480_v38, %v546_v34 }
  0xc9   : > { %v1022_v46 = vpack.c.bf16 %v558_v43, %v556_v42  ;;  %v509_v47 = vsel %vm508_vm8, %v505_v44, %v507_v41  ;;  %v510_v11 = vsel %vm508_vm8, %v507_v41, %v505_v44  ;;  %v1024_v48 = vpack.c.bf16 %v557_v45, %v555_v12 }
  0xca   : > { %v525_v49 = vmul.f32 %v1522_v33, %v510_v11  ;;  %v524_v50 = vmul.f32 %v1527_v40, %v509_v47 }
  0xcb   : > { %1023 = vmatprep.subr.bf16.mxu0 %v1022_v46 }
  0xcc   : > { %1025 = vmatpush1.bf16.msra.mxu0 %v1024_v48 }
  0xcd   : > { %1004 = vmatprep.subr.msk.mxu0 %vm550_vm4, %v525_v49 }
  0xd0   : > { %1005 = vmatpush1.msk.msra.mxu0 %vm550_vm4, %v524_v50 }
  0xd1   : > { %1006 = vmatmul.mubr.msk.f32.vlgmr.msra.gmra.mrb[0].mxu0 %vm559_vm9, %v345_v51  ;;  %1008 = vmatprep.subr.msk.mxu0 %vm550_vm4, %v1359_v1  ;;  %v798_v1 = vld [vmem:[%s1698_s5] sm:$0xff] }
  0xd2   : > { %1009 = vmatpush1.msk.msra.mxu0 %vm550_vm4, %v1351_v0  ;;  %889 = vmatprep.mubr.f32.mxu0 %v1208_v2  ;;  %v816_v0 = vld [vmem:[%s1700_s7] sm:$0xff] }
  0xd3   : > { %v806_v2 = vld [vmem:[%s1699_s6] sm:$0xff] }
  0xd5   : > { %1010 = vmatmul.mubr.msk.f32.vlgmr.msra.gmra.mrb[2].mxu0 %vm817_vm10, %v816_v0 }
  0xd9   : > { %v644_v54 = vpop.permute.xlu0 %643  ;;  %v652_v56 = vpop.permute.xlu1 %651 }
 0x1a4   : > { %v635_v55 = vpop.f32.mrb[0].mxu0 }
 0x1a5   : > { %v646_v57 = vmul.f32 %v644_v54, %v635_v55  ;;  %v637_v58 = vpop.f32.mrb[1].mxu0 }
 0x1a6   : > { %v647_v59 = vmul.f32 %v644_v54, %v637_v58 }
 0x1a7   : > { %v654_v60 = vadd.f32 %v652_v56, %v646_v57 }
 0x1a8   : > { %v655_v61 = vadd.f32 %v652_v56, %v647_v59 }
 0x1a9   : > { %v1551_v62 = vmax.f32 %v654_v60, 0.0 }
 0x1aa   : > { %v1553_v63 = vmax.f32 %v655_v61, 0.0 }
 0x1ab   : > { %659 = vrot.lane.b32.xlu1 %v1551_v62, %s1204_s14 }
 0x1ac   : > { %661 = vrot.lane.b32.xlu0 %v1553_v63, %s1204_s14 }
 0x1af   : > { %667 = vrot.lane.b32.xlu1 %v1551_v62, %s1203_s21 }
 0x1b0   : > { %669 = vrot.lane.b32.xlu0 %v1553_v63, %s1203_s21  ;;  %s917_s21 = sshll.u32 %s338_s29, 4  ;;  %s1653_s21 = int_to_ptr.vmem [resolvable:$true] %s917_s21 }
 0x1b1   : > { %p1140_p2 = scmp.lt.s32.totalorder %s1653_s21, %s1138_s22 }
 0x1b3   : > { %675 = vrot.lane.b32.xlu1 %v1551_v62, %s1205_s16 }
 0x1b4   : > { %677 = vrot.lane.b32.xlu0 %v1553_v63, %s1205_s16  ;;  %s1717_s16 = smov 112  }
 0x1b7   : > { %683 = vrot.lane.b32.xlu1 %v1551_v62, %s1202_s23 }
 0x1b8   : > { %685 = vrot.lane.b32.xlu0 %v1553_v63, %s1202_s23  ;;  %s1718_s23 = smov 111  }
 0x1bb   : > { %691 = vrot.lane.b32.xlu1 %v1551_v62, %s1206_s17 }
 0x1bc   : > { %693 = vrot.lane.b32.xlu0 %v1553_v63, %s1206_s17  ;;  %s903_s17 = scalar_lea.sflag [#allocation4], %s336_s27 }
 0x1bf   : > { %699 = vrot.lane.b32.xlu1 %v1551_v62, %s1209_s25 }
 0x1c0   : > { %701 = vrot.lane.b32.xlu0 %v1553_v63, %s1209_s25  ;;  %s1133_s25 = scalar_lea.vmem %s1653_s21, 256 }
 0x1c1   : > { %p1134_p5 = scmp.ne.s32.totalorder %s1653_s21, %s1133_s25  ;;  %p1141_p3 = scmp.lt.s32.totalorder %s1139_s26, %s1133_s25 }
 0x1c3   : > { %707 = vrot.lane.b32.xlu1 %v1551_v62, %s1717_s16  ;;  %p1135_p10 = pnand %p1134_p5, %p1719_p9  ;;  %p1142_p4 = por %p1141_p3, %p1140_p2 }
 0x1c4   : > { %709 = vrot.lane.b32.xlu0 %v1553_v63, %s1717_s16 }
 0x1c5   : > { %p1136_p12 = pneg %p1135_p10 }
 0x1c7   : > { %715 = vrot.lane.b32.xlu1 %v1551_v62, %s1718_s23  ;;  %p1143_p7 = pnand %p1142_p4, %p1136_p12 }
 0x1c8   : > { %717 = vrot.lane.b32.xlu0 %v1553_v63, %s1718_s23  ;;  %s1651_s23 = scalar_lea.hbm %s1702_s9, %s1017_s24 }
 0x1cb   : > { %801 = vperm.xlu1 %1103, %v798_v1  }
 0x1cc   : > { %809 = vperm.xlu0 %1102, %v806_v2  }
 0x21d   : > { %v660_v3 = vpop.permute.xlu1 %659 }
 0x21e   : > { %v662_v6 = vpop.permute.xlu0 %661 }
 0x21f   : > { %v663_v7 = vsel %vm355_vm2, %v660_v3, %v662_v6  ;;  %v664_v9 = vsel %vm355_vm2, %v662_v6, %v660_v3 }
 0x220   : > { %v665_v16 = vmul.f32 %v664_v9, %v1435_v25  ;;  %v666_v24 = vmul.f32 %v663_v7, %v1438_v26 }
 0x221   : > { %v668_v10 = vpop.permute.xlu1 %667 }
 0x222   : > { %v670_v13 = vpop.permute.xlu0 %669 }
 0x223   : > { %v671_v14 = vsel %vm376_vm1, %v668_v10, %v670_v13  ;;  %v672_v15 = vsel %vm376_vm1, %v670_v13, %v668_v10 }
 0x224   : > { %v673_v19 = vmul.f32 %v672_v15, %v1425_v22  ;;  %v674_v27 = vmul.f32 %v671_v14, %v1428_v23 }
 0x225   : > { %v676_v28 = vpop.permute.xlu1 %675 }
 0x226   : > { %v678_v29 = vpop.permute.xlu0 %677  ;;  %v1026_v30 = vpack.c.bf16 %v674_v27, %v666_v24  ;;  %v1028_v31 = vpack.c.bf16 %v673_v19, %v665_v16 }
 0x227   : > { %v679_v32 = vsel %vm398_vm3, %v676_v28, %v678_v29  ;;  %v680_v34 = vsel %vm398_vm3, %v678_v29, %v676_v28 }
 0x228   : > { %1027 = vmatprep.subr.bf16.mxu1 %v1026_v30  ;;  %v681_v26 = vmul.f32 %v680_v34, %v1450_v35  ;;  %v682_v38 = vmul.f32 %v679_v32, %v1453_v36 }
 0x229   : > { %1029 = vmatpush1.bf16.msra.mxu1 %v1028_v31  ;;  %v684_v37 = vpop.permute.xlu1 %683 }
 0x22a   : > { %v686_v25 = vpop.permute.xlu0 %685 }
 0x22b   : > { %v687_v22 = vsel %vm420_vm0, %v684_v37, %v686_v25  ;;  %v688_v23 = vsel %vm420_vm0, %v686_v25, %v684_v37 }
 0x22c   : > { %v689_v39 = vmul.f32 %v688_v23, %v1411_v17  ;;  %v690_v41 = vmul.f32 %v687_v22, %v1414_v18 }
 0x22d   : > { %v692_v42 = vpop.permute.xlu1 %691 }
 0x22e   : > { %v694_v43 = vpop.permute.xlu0 %693  ;;  %v1030_v44 = vpack.c.bf16 %v690_v41, %v682_v38  ;;  %v1032_v12 = vpack.c.bf16 %v689_v39, %v681_v26 }
 0x22f   : > { %v695_v45 = vsel %vm442_vm5, %v692_v42, %v694_v43  ;;  %v696_v46 = vsel %vm442_vm5, %v694_v43, %v692_v42 }
 0x230   : > { %v697_v47 = vmul.f32 %v695_v45, %v1472_v52  ;;  %v698_v35 = vmul.f32 %v696_v46, %v1475_v53  ;;  %1031 = vmatprep.subr.bf16.mxu1 %v1030_v44 }
 0x231   : > { %1033 = vmatpush1.bf16.msra.mxu1 %v1032_v12  ;;  %v700_v36 = vpop.permute.xlu1 %699 }
 0x232   : > { %v702_v17 = vpop.permute.xlu0 %701  ;;  %v1034_v18 = vpack.c.bf16 %v698_v35, %v1553_v63  ;;  %v1036_v11 = vpack.c.bf16 %v697_v47, %v1551_v62 }
 0x233   : > { %v703_v48 = vsel %vm464_vm7, %v700_v36, %v702_v17  ;;  %v704_v49 = vsel %vm464_vm7, %v702_v17, %v700_v36 }
 0x234   : > { %1035 = vmatprep.subr.bf16.mxu1 %v1034_v18  ;;  %v705_v54 = vmul.f32 %v703_v48, %v1508_v20  ;;  %v706_v55 = vmul.f32 %v704_v49, %v1511_v21  ;;  %v658_v20 = vld [vmem:[#allocation2] sm:$0xff] }
 0x235   : > { %1037 = vmatpush1.bf16.msra.mxu1 %v1036_v11  ;;  %v708_v50 = vpop.permute.xlu1 %707 }
 0x236   : > { %v710_v52 = vpop.permute.xlu0 %709 }
 0x237   : > { %v711_v53 = vsel %vm486_vm6, %v708_v50, %v710_v52  ;;  %v712_v51 = vsel %vm486_vm6, %v710_v52, %v708_v50 }
 0x238   : > { %v713_v56 = vmul.f32 %v711_v53, %v1490_v4  ;;  %v714_v57 = vmul.f32 %v712_v51, %v1493_v5  ;;  %v891_v5 = vpop.f32.mrb[2].mxu0 }
 0x239   : > { %v716_v58 = vpop.permute.xlu1 %715  ;;  %v893_v21 = vpop.f32.mrb[3].mxu0 }
 0x23a   : > { %v718_v59 = vpop.permute.xlu0 %717  ;;  %v1038_v60 = vpack.c.bf16 %v714_v57, %v706_v55  ;;  %v1040_v61 = vpack.c.bf16 %v713_v56, %v705_v54 }
 0x23b   : > { %v720_v62 = vsel %vm508_vm8, %v718_v59, %v716_v58  ;;  %v719_v63 = vsel %vm508_vm8, %v716_v58, %v718_v59 }
 0x23c   : > { %v722_v0 = vmul.f32 %v720_v62, %v1522_v33  ;;  %1039 = vmatprep.subr.bf16.mxu1 %v1038_v60  ;;  %v721_v4 = vmul.f32 %v719_v63, %v1527_v40 }
 0x23d   : > { %1041 = vmatpush1.bf16.msra.mxu1 %v1040_v61 }
 0x23e   : > { %743 = vmatprep.subr.mxu1 %v722_v0 }
 0x241   : > { %744 = vmatpush1.msra.mxu1 %v721_v4 }
 0x242   : > { %1007 = vmatmul.mubr.msk.f32.vlgmr.msra.gmra.mrb[0].mxu1 %vm723_vm11, %v658_v20 }
 0x24a   : > { %v802_v1 = vpop.permute.xlu1 %801 }
 0x24b   : > { %v810_v6 = vpop.permute.xlu0 %809 }
 0x315   : > { %v793_v2 = vpop.f32.mrb[0].mxu1 }
 0x316   : > { %v804_v3 = vmul.f32 %v802_v1, %v793_v2  ;;  %v795_v8 = vpop.f32.mrb[1].mxu1 }
 0x317   : > { %v805_v33 = vmul.f32 %v802_v1, %v795_v8 }
 0x318   : > { %v812_v7 = vadd.f32 %v810_v6, %v804_v3 }
 0x319   : > { %v813_v9 = vadd.f32 %v810_v6, %v805_v33 }
 0x31a   : > { %v814_v10 = vmax.f32 %v812_v7, 0.0 }
 0x31b   : > { %v815_v40 = vmax.f32 %v813_v9, 0.0 }
 0x31c   : > { %v896_v13 = vadd.f32 %v891_v5, %v814_v10 }
 0x31d   : > { %v897_v14 = vadd.f32 %v893_v21, %v815_v40 }
 0x31e   : > { %v898_v15 = vmax.f32 %v896_v13, 0.0 }
 0x31f   : > { %v899_v16 = vmax.f32 %v897_v14, 0.0 }
 0x320   : > { %900 = vst [vmem:[%s338_s29] sm:$0xff] %v898_v15 }
 0x321   : > { %901 = vst [vmem:[%s338_s29 + $0x8] sm:$0xff] %v899_v16 }
 0x322   : > { %1146 = shalt.err (!%p1143_p7)
}
 0x323   : > { %s1147_s27 = scalar_lea.hbm %s1651_s23, 256  ;;  %s1151_s29 = scalar_lea.hbm %s1702_s9, 512 }
 0x324   : > { %p1148_p8 = scmp.ne.s32.totalorder %s1651_s23, %s1147_s27  ;;  %p1152_p1 = scmp.lt.u32.totalorder %s1651_s23, %s1702_s9 }
 0x325   : > { %p1153_p0 = scmp.lt.u32.totalorder %s1151_s29, %s1147_s27  ;;  %p1155_p5 = scmp.lt.u32.totalorder %s1147_s27, %s1651_s23 }
 0x326   : > { %p1149_p11 = pnand %p1148_p8, %p1719_p9 }
 0x327   : > { %p1154_p6 = por %p1153_p0, %p1152_p1 }
 0x328   : > { %p1150_p13 = pneg %p1149_p11 }
 0x329   : > { %p1156_p10 = por %p1155_p5, %p1154_p6 }
 0x32b   : > { %p1157_p12 = pnand %p1156_p10, %p1150_p13 }
 0x32d   : > { %1160 = shalt.err (!%p1157_p12)
}
 0x32e   : > { %1046 = dma.vmem_to_hbm [thread:$0]  (%p1719_p9), %s1653_s21, 256, %s1651_s23, %s903_s17  }
 0x32f PF: > { %p1058_p2 = scmp.ge.s32.totalorder %s1199_s12, 2  ;;  %s929_s25 = sand.u32 1, %s1187_s30  }
 0x330   : > { %p1720_p3 = scmp.ne.s32.totalorder %s1711_s20, 0  ;;  %s930_s13 = scalar_lea.sflag [#allocation4], %s929_s25 }
 0x332   : > { %p1053_p4 = pnand %p1058_p2, %p1720_p3 }
 0x334   : > { %1182 = dma.done.wait (!%p1053_p4), %s930_s13, 256  }
 0x335   : > { %1184 = vsyncadd (!%p1053_p4), %s930_s13, 4294967040  ;;  %p20_p7 = scmp.ge.s32.totalorder %s1288_s15, 4   ;;  %s1721_s30 = smov %s1191_s10 }
 0x336   : > { %s1722_s10 = smov %s1195_s11  ;;  %s1723_s11 = smov %s1299_s18 }
 0x337   : > { %s1724_s12 = smov %s1288_s15  ;;  %22 = sbr.rel (!%p20_p7) target bundleno = 4 (0x4), region = 103 }
 0x33e   :  { %935 = vsyncpa [#allocation3], 1 }
 0x33f   :  { %937 = vsyncpa [#allocation3 + $0x1], 1 }
 0x340   :  { %938 = vsyncpa [#allocation4], 1 }
 0x341   :  { %940 = vsyncpa [#allocation4 + $0x1], 1 }

</bundles_post_ra>
